<compile_context>
chip_gen: v5e
topology: v5e:2x2
jax: 0.10.0
libtpu: 0.0.40
codegen_flags: <defaults>
</compile_context>

<pallas_src>
import math

import jax
import jax.numpy as jnp
from jax.experimental import pallas as pl
from jax.experimental.pallas import tpu as pltpu


def _build_pe(d_model: int, max_len: int = 5000) -> jnp.ndarray:
    """Deterministic positional-encoding buffer, identical to the PyTorch __init__."""
    position = jnp.arange(0, max_len, dtype=jnp.float32)[:, None]            # (max_len, 1)
    div_term = jnp.exp(
        jnp.arange(0, d_model, 2, dtype=jnp.float32) * (-math.log(10000.0) / d_model)
    )                                                                         # (ceil(d/2),)
    pe = jnp.zeros((max_len, d_model), dtype=jnp.float32)
    pe = pe.at[:, 0::2].set(jnp.sin(position * div_term))
    pe = pe.at[:, 1::2].set(jnp.cos(position * div_term))
    return pe


def _add_pe_kernel(x_ref, pe_ref, o_ref):
    # Blocks are either identically shaped (tiled paths) or broadcastable
    # ((S,D) pe against (B,S,D) x in the un-gridded small path).  The add is
    # done in the promoted dtype and cast to the output dtype (which is the
    # promoted dtype, matching PyTorch's x + f32-buffer semantics).
    o_ref[...] = (x_ref[...] + pe_ref[...]).astype(o_ref.dtype)


_TARGET_BLOCK_BYTES = 2 * 1024 * 1024       # ~2 MiB per operand block (~12 MiB pipelined)
_SMALL_PROBLEM_VMEM_BYTES = 8 * 1024 * 1024  # below this (padding-aware), run one block
_VMEM_LIMIT_BYTES = 32 * 1024 * 1024         # safe on v5e/v6e/v7x; just headroom


def _round_up(n: int, m: int) -> int:
    return ((n + m - 1) // m) * m


def _native_sublane(*dtypes) -> int:
    """Minimum sublane tile so every operand stays natively packed."""
    sub = 8
    for dt in dtypes:
        sz = jnp.dtype(dt).itemsize
        sub = max(sub, {4: 8, 2: 16, 1: 32}.get(sz, 8))
    return sub


def positional_encoding_forward(x: jnp.ndarray, pe: jnp.ndarray) -> jnp.ndarray:
    """x: (B, S, D).  Returns x + pe[:S, :] with the add done in a Pallas kernel."""
    B, S, D = x.shape
    max_len = pe.shape[0]
    if S > max_len:
        raise ValueError(f"sequence length {S} exceeds max_len {max_len}")

    # PyTorch semantics: adding the f32 buffer promotes half-precision x.
    out_dtype = jnp.promote_types(x.dtype, pe.dtype)
    x_item = jnp.dtype(x.dtype).itemsize
    pe_item = jnp.dtype(pe.dtype).itemsize
    out_item = jnp.dtype(out_dtype).itemsize
    max_item = max(x_item, pe_item, out_item)
    sub = _native_sublane(x.dtype, pe.dtype, out_dtype)

    compiler_params = pltpu.CompilerParams(
        dimension_semantics=("parallel", "parallel"),
        vmem_limit_bytes=_VMEM_LIMIT_BYTES,
    )

    # ---- small-problem fast path: one un-gridded block, zero grid overhead ----
    pad_S = _round_up(S, sub)
    pad_D = _round_up(D, 128)
    vmem_est = B * pad_S * pad_D * (x_item + out_item) + pad_S * pad_D * pe_item
    if vmem_est <= _SMALL_PROBLEM_VMEM_BYTES:
        return pl.pallas_call(
            _add_pe_kernel,
            out_shape=jax.ShapeDtypeStruct((B, S, D), out_dtype),
        )(x, pe[:S, :])

    # ---- lane-dense 3-D path: D is already a multiple of 128 ----
    if D % 128 == 0:
        ts = _TARGET_BLOCK_BYTES // (D * max_item)
        ts = max(sub, (ts // sub) * sub)
        ts = min(ts, _round_up(S, sub))
        grid = (pl.cdiv(S, ts), B)  # batch innermost -> pe tile resident across B
        return pl.pallas_call(
            _add_pe_kernel,
            out_shape=jax.ShapeDtypeStruct((B, S, D), out_dtype),
            grid=grid,
            in_specs=[
                pl.BlockSpec((pl.Squeezed(), ts, D), lambda s, b: (b, s, 0)),  # x
                pl.BlockSpec((ts, D), lambda s, b: (s, 0)),  # pe: windows full (max_len, D)
            ],
            out_specs=pl.BlockSpec((pl.Squeezed(), ts, D), lambda s, b: (b, s, 0)),
            compiler_params=compiler_params,
        )(x, pe)

    # ---- sublane-dense flattened path: D not lane-sized but S*D % 128 == 0 ----
    F = S * D
    if F % 128 == 0:
        rows = F // 128
        x3 = x.reshape(B, rows, 128)          # contiguous row-major reshape: no data movement
        pe3 = pe[:S, :].reshape(rows, 128)    # tiny (S*D) copy; reused across all B
        tr = _TARGET_BLOCK_BYTES // (128 * max_item)
        tr = max(sub, (tr // sub) * sub)
        tr = min(tr, _round_up(rows, sub))
        grid = (pl.cdiv(rows, tr), B)
        out3 = pl.pallas_call(
            _add_pe_kernel,
            out_shape=jax.ShapeDtypeStruct((B, rows, 128), out_dtype),
            grid=grid,
            in_specs=[
                pl.BlockSpec((pl.Squeezed(), tr, 128), lambda r, b: (b, r, 0)),  # x
                pl.BlockSpec((tr, 128), lambda r, b: (r, 0)),                    # pe (resident)
            ],
            out_specs=pl.BlockSpec((pl.Squeezed(), tr, 128), lambda r, b: (b, r, 0)),
            compiler_params=compiler_params,
        )(x3, pe3)
        return out3.reshape(B, S, D)

    # ---- fallback: odd D that doesn't flatten cleanly; tile along S, full-D lanes ----
    # Lanes beyond D are masked; block sizing accounts for the lane padding so the
    # real VMEM footprint still targets ~2 MiB per operand.
    lane_D = _round_up(D, 128)
    ts = _TARGET_BLOCK_BYTES // (lane_D * max_item)
    ts = max(sub, (ts // sub) * sub)
    ts = min(ts, _round_up(S, sub))
    grid = (pl.cdiv(S, ts), B)
    return pl.pallas_call(
        _add_pe_kernel,
        out_shape=jax.ShapeDtypeStruct((B, S, D), out_dtype),
        grid=grid,
        in_specs=[
            pl.BlockSpec((pl.Squeezed(), ts, D), lambda s, b: (b, s, 0)),  # x (D = full dim)
            pl.BlockSpec((ts, D), lambda s, b: (s, 0)),                    # pe (full buffer)
        ],
        out_specs=pl.BlockSpec((pl.Squeezed(), ts, D), lambda s, b: (b, s, 0)),
        compiler_params=compiler_params,
    )(x, pe)


if __name__ == "__main__":
    max_len = 5000

    # 1) Canonical small shapes from the module: (batch=2, seq=8, d_model=32)
    #    -> small-problem single-block path.
    B, S, D = 2, 8, 32
    key = jax.random.PRNGKey(0)
    x = jax.random.normal(key, (B, S, D), dtype=jnp.float32)
    pe = _build_pe(D, max_len)
    out = jax.block_until_ready(positional_encoding_forward(x, pe))
    ref = x + pe[:S, :]
    assert out.shape == (B, S, D) and out.dtype == ref.dtype
    assert jnp.allclose(out, ref, atol=1e-6), "mismatch (small path, f32)"

    # 1b) bf16 input on the small path: output promotes to f32 like PyTorch.
    x_h = jax.random.normal(jax.random.PRNGKey(3), (B, S, D), dtype=jnp.bfloat16)
    out_h = jax.block_until_ready(positional_encoding_forward(x_h, pe))
    ref_h = x_h.astype(jnp.float32) + pe[:S, :]
    assert out_h.dtype == jnp.float32
    assert jnp.allclose(out_h, ref_h, atol=1e-6), "mismatch (small path, bf16 promote)"

    # 2) Lane-dense tiled path (D % 128 == 0), with a partial last seq tile.
    B2, S2, D2 = 2, 2304, 256
    x2 = jax.random.normal(jax.random.PRNGKey(1), (B2, S2, D2), dtype=jnp.float32)
    pe2 = _build_pe(D2, max_len)
    out2 = jax.block_until_ready(positional_encoding_forward(x2, pe2))
    ref2 = x2 + pe2[:S2, :]
    assert jnp.allclose(out2, ref2, atol=1e-6), "mismatch (lane-dense 3-D path)"

    # 3) Sublane-dense flattened path (D=96: not lane-sized, but S*D % 128 == 0).
    B3, S3, D3 = 4, 2048, 96
    x3 = jax.random.normal(jax.random.PRNGKey(2), (B3, S3, D3), dtype=jnp.float32)
    pe3 = _build_pe(D3, max_len)
    out3 = jax.block_until_ready(positional_encoding_forward(x3, pe3))
    ref3 = x3 + pe3[:S3, :]
    assert jnp.allclose(out3, ref3, atol=1e-6), "mismatch (sublane-dense flattened path)"

    print("KERNEL_OK")
</pallas_src>

<mosaic_0001>
module attributes {stable_mosaic.version = 11 : i64} {
  func.func @_add_pe_kernel(%arg0: memref<2x8x32xf32, #tpu.memory_space<vmem>>, %arg1: memref<8x32xf32, #tpu.memory_space<vmem>>, %arg2: memref<2x8x32xf32, #tpu.memory_space<vmem>>) attributes {dimension_semantics = [], scalar_prefetch = 0 : i64, scratch_operands = 0 : i64, tpu.core_type = #tpu.core_type<tc>} {
    %c0 = arith.constant 0 : index
    %c0_0 = arith.constant 0 : index
    %c0_1 = arith.constant 0 : index
    %0 = vector.load %arg0[%c0, %c0_0, %c0_1] : memref<2x8x32xf32, #tpu.memory_space<vmem>>, vector<2x8x32xf32>
    %c0_2 = arith.constant 0 : index
    %c0_3 = arith.constant 0 : index
    %1 = vector.load %arg1[%c0_2, %c0_3] : memref<8x32xf32, #tpu.memory_space<vmem>>, vector<8x32xf32>
    %2 = vector.shape_cast %1 : vector<8x32xf32> to vector<1x8x32xf32>
    %3 = vector.broadcast %2 : vector<1x8x32xf32> to vector<2x8x32xf32>
    %4 = arith.addf %0, %3 : vector<2x8x32xf32>
    %c0_4 = arith.constant 0 : index
    %c0_5 = arith.constant 0 : index
    %c0_6 = arith.constant 0 : index
    %5 = vector.load %arg2[%c0_4, %c0_5, %c0_6] : memref<2x8x32xf32, #tpu.memory_space<vmem>>, vector<2x8x32xf32>
    tpu.vector_store %arg2[%c0_4, %c0_5, %c0_6], %4 {strides = array<i32>} : memref<2x8x32xf32, #tpu.memory_space<vmem>>, vector<2x8x32xf32>,
    return
  }
}

</mosaic_0001>

<bundles_post_ra>
// kernel: tpu_custom_call.1
= control target key start
LH: loop header
LB: loop body
LE: loop exit
PB: predicated region body
PF: predicated region fallthrough
CT: control target
= control target key end

     0   :  { %7 = vsyncpa [#allocation3], 0  ;;  %s182_s0 = inlined_call_operand.hbm [shape: f32[2,8,32], index: 0, kind: input, shape index: {}]   ;;  %s183_s1 = inlined_call_operand.hbm [shape: f32[8,32], index: 1, kind: input, shape index: {}]   ;;  %s184_s2 = inlined_call_operand.hbm [shape: f32[2,8,32], index: 2, kind: output, shape index: {}]  }
   0x1   :  { %8 = vsyncpa [#allocation6], 0 }
   0x2   :  { %9 = vsyncpa [#allocation4], 0  ;;  %s14_s11 = sshll.u32 %s182_s0, 4  ;;  %s153_s12 = smov [#allocation2]   ;;  %s15_s11 = int_to_ptr.hbm [resolvable:$true] %s14_s11 }
   0x3   :  { %s16_s13 = sshll.u32 %s153_s12, 4  ;;  %s28_s16 = sshll.u32 %s183_s1, 4  ;;  %s17_s13 = int_to_ptr.vmem [resolvable:$true] %s16_s13  ;;  %s29_s16 = int_to_ptr.hbm [resolvable:$true] %s28_s16 }
   0x4   :  { %s154_s17 = smov 128   ;;  %s155_s18 = smov 8  }
   0x5   :  { %22 = dma.hbm_to_vmem [thread:$0]  %s15_s11, 256, %s17_s13, [#allocation3], %s154_s17, %s154_s17, %s155_s18  }
   0x6   :  { %s156_s19 = smov [#allocation5]  }
   0x7   :  { %s30_s20 = sshll.u32 %s156_s19, 4  ;;  %s31_s20 = int_to_ptr.vmem [resolvable:$true] %s30_s20 }
   0x8   :  { %33 = dma.hbm_to_vmem [thread:$0]  %s29_s16, 128, %s31_s20, [#allocation6]  }
   0x9   :  { %147 = dma.done.wait [#allocation3], 256  }
   0xa   :  { %148 = vsyncadd [#allocation3], 4294967040 }
   0xb   :  { %149 = dma.done.wait [#allocation6], 128  }
   0xc   :  { %150 = vsyncadd [#allocation6], 4294967168  ;;  %s157_s0 = smov [#allocation7]   ;;  %s56_s24 = sshll.u32 %s184_s2, 4  ;;  %v42_v0 = vld [vmem:[#allocation2] sm:$0xff]  ;;  %v44_v1 = vld [vmem:[#allocation5] sm:$0xff]  ;;  %s57_s24 = int_to_ptr.hbm [resolvable:$true] %s56_s24 }
   0xd   :  { %s54_s21 = sshll.u32 %s157_s0, 4  ;;  %vm47_vm0 = vcmask 261120   ;;  %v43_v2 = vld [vmem:[#allocation2 + $0x8] sm:$0xff]  ;;  %v45_v3 = vadd.f32 %v44_v1, %v42_v0  ;;  %s55_s21 = int_to_ptr.vmem [resolvable:$true] %s54_s21 }
   0xe   :  { %v46_v4 = vadd.f32 %v44_v1, %v43_v2 }
   0xf   :  { %48 = vst.msk [vmem:[#allocation7] sm:$0xff] %vm47_vm0, %v45_v3 }
  0x10   :  { %49 = vst.msk [vmem:[#allocation7 + $0x8] sm:$0xff] %vm47_vm0, %v46_v4 }
  0x11   :  { %62 = dma.vmem_to_hbm [thread:$0]  %s55_s21, 256, %s57_s24, [#allocation4], %s154_s17, %s154_s17, %s155_s18  }
  0x12   :  { %151 = dma.done.wait [#allocation4], 256  }
  0x13   :  { %152 = vsyncadd [#allocation4], 4294967040 }
  0x14   :  { %67 = vsyncpa [#allocation3], 1 }
  0x15   :  { %68 = vsyncpa [#allocation6], 1 }
  0x16   :  { %69 = vsyncpa [#allocation4], 1 }

</bundles_post_ra>
